<compile_context>
chip_gen: v6e
topology: v6e:2x2x1
jax: 0.10.0
libtpu: 0.0.40
codegen_flags: <defaults>
</compile_context>

<pallas_src>
import functools
import math

import jax
import jax.numpy as jnp
from jax import lax
from jax.experimental import pallas as pl
from jax.experimental.pallas import tpu as pltpu


def _attention_kernel(q_ref, k_ref, v_ref, o_ref, *, scale):
    # Batch dim is squeezed by the BlockSpec:
    #   q_ref: (TQ, D)   k_ref, v_ref: (S, D)   o_ref: (TQ, D)

    # Fold the 1/sqrt(d_model) scale into q (TQ*D multiplies, not TQ*S),
    # keeping the MXU operand in the input dtype.
    q = q_ref[...] * jnp.asarray(scale, dtype=q_ref.dtype)
    k = k_ref[...]
    v = v_ref[...]

    # scores (TQ, S) = q @ k^T — contraction on D, f32 accumulation on MXU.
    s = lax.dot_general(q, k, (((1,), (1,)), ((), ())),
                        preferred_element_type=jnp.float32)

    # Numerically stable softmax in f32; the 1/sum normalization is folded
    # into the final output scaling (EUP approx reciprocal on TQ*1 elems).
    s = s - jnp.max(s, axis=-1, keepdims=True)
    p = jnp.exp(s)
    inv_denom = pl.reciprocal(jnp.sum(p, axis=-1, keepdims=True), approx=True)

    # output (TQ, D) = p @ v — MXU operands in v.dtype, f32 accumulation.
    o = lax.dot_general(p.astype(v.dtype), v, (((1,), (0,)), ((), ())),
                        preferred_element_type=jnp.float32)
    o_ref[...] = (o * inv_denom).astype(o_ref.dtype)


def _pick_q_tile(seq_len):
    """Query tile length: whole sequence when short, else a 128-aligned tile."""
    if seq_len <= 512:
        return seq_len
    for t in (512, 256, 128):
        if seq_len % t == 0:
            return t
    return seq_len  # fallback: no tiling


def multihead_attention_forward(query, key, value, d_model, *, q_tile=None):
    """Scaled dot-product attention, batch-first (B, S, D) layout."""
    B, S, D = query.shape
    assert key.shape == (B, S, D) and value.shape == (B, S, D)
    scale = 1.0 / math.sqrt(d_model)

    tq = q_tile if q_tile is not None else _pick_q_tile(S)
    assert S % tq == 0, "query tile must divide sequence length"
    n_q = S // tq

    kernel = functools.partial(_attention_kernel, scale=scale)

    # Squeeze the size-1 batch dim out of the kernel refs (None == pl.Squeezed()).
    q_spec = pl.BlockSpec((None, tq, D), lambda b, qi: (b, qi, 0))
    kv_spec = pl.BlockSpec((None, S, D), lambda b, qi: (b, 0, 0))

    # Rough VMEM estimate: double-buffered q/k/v/o blocks + f32 score tile.
    elem = jnp.dtype(query.dtype).itemsize
    vmem_est = 2 * 2 * elem * (tq * D + S * D) + 4 * tq * S + 4 * tq * D
    compiler_kwargs = dict(dimension_semantics=("parallel", "parallel"))
    if vmem_est > 16 * 1024 * 1024:  # only raise the scoped limit when needed
        compiler_kwargs["vmem_limit_bytes"] = min(64 * 1024 * 1024,
                                                  int(2 * vmem_est))
    # TODO(synk): with d_model < 128 (test uses D=32) output stores are masked
    # (lane-underfilled); padding d_model to 128 would make the store path
    # lane-dense, but would change the module's I/O contract.

    return pl.pallas_call(
        kernel,
        out_shape=jax.ShapeDtypeStruct((B, S, D), query.dtype),
        grid=(B, n_q),
        in_specs=[q_spec, kv_spec, kv_spec],
        out_specs=q_spec,
        compiler_params=pltpu.CompilerParams(**compiler_kwargs),
    )(query, key, value)


class MultiHeadAttentionPallas:
    """Mirror of the PyTorch module; only forward() math matters."""

    def __init__(self, d_model, nhead, dropout=0.1, key=None):
        self.d_model = d_model
        self.nhead = nhead
        if key is None:
            key = jax.random.PRNGKey(42)
        k1, k2, k3, k4, k5, k6 = jax.random.split(key, 6)
        bound = 1.0 / math.sqrt(d_model)
        # Deterministically-initialized parameters (unused by forward(),
        # exactly like the reference PyTorch module's forward()).
        self.w_q = (jax.random.uniform(k1, (d_model, d_model), jnp.float32, -bound, bound),
                    jax.random.uniform(k2, (d_model,), jnp.float32, -bound, bound))
        self.w_k = (jax.random.uniform(k3, (d_model, d_model), jnp.float32, -bound, bound),
                    jax.random.uniform(k4, (d_model,), jnp.float32, -bound, bound))
        self.w_v = (jax.random.uniform(k5, (d_model, d_model), jnp.float32, -bound, bound),
                    jax.random.uniform(k6, (d_model,), jnp.float32, -bound, bound))
        # TODO(synk): self.attn (nn.MultiheadAttention) parameters are never
        # touched by forward(); omitted.

    def forward(self, query, key, value):
        return multihead_attention_forward(query, key, value, self.d_model)


def _reference(query, key, value, d_model):
    s = jnp.einsum("bqd,bkd->bqk", query, key) / math.sqrt(d_model)
    w = jax.nn.softmax(s, axis=-1)
    return jnp.einsum("bqk,bkd->bqd", w, value)


if __name__ == "__main__":
    B, S, D = 2, 8, 32          # batch=2, seq=8, d_model=32
    nhead = 4

    root = jax.random.PRNGKey(0)
    kq, kk, kv, kp = jax.random.split(root, 4)
    query = jax.random.normal(kq, (B, S, D), jnp.float32)
    key = jax.random.normal(kk, (B, S, D), jnp.float32)
    value = jax.random.normal(kv, (B, S, D), jnp.float32)

    mha = MultiHeadAttentionPallas(d_model=D, nhead=nhead, key=kp)
    out = mha.forward(query, key, value)
    out = jax.block_until_ready(out)

    ref = _reference(query, key, value, D)
    assert out.shape == (B, S, D)
    # Tolerance relaxed slightly for the EUP approx reciprocal in the softmax
    # normalization (and to remain valid for bf16 inputs).
    assert jnp.allclose(out, ref, atol=1e-2, rtol=1e-2), "mismatch vs reference"

    print("KERNEL_OK")
</pallas_src>

<mosaic_0001>
module attributes {stable_mosaic.version = 11 : i64} {
  func.func @_attention_kernel(%arg0: i32, %arg1: i32, %arg2: memref<1x8x32xf32, #tpu.memory_space<vmem>>, %arg3: memref<1x8x32xf32, #tpu.memory_space<vmem>>, %arg4: memref<1x8x32xf32, #tpu.memory_space<vmem>>, %arg5: memref<1x8x32xf32, #tpu.memory_space<vmem>>) attributes {dimension_semantics = [#tpu.dimension_semantics<parallel>, #tpu.dimension_semantics<parallel>], iteration_bounds = array<i64: 2, 1>, scalar_prefetch = 0 : i64, scratch_operands = 0 : i64, tpu.core_type = #tpu.core_type<tc>, window_params = [{transform_indices = @transform_0, window_bounds = array<i64: 1, 8, 32>}, {transform_indices = @transform_1, window_bounds = array<i64: 1, 8, 32>}, {transform_indices = @transform_2, window_bounds = array<i64: 1, 8, 32>}, {transform_indices = @transform_3, window_bounds = array<i64: 1, 8, 32>}]} {
    %c0 = arith.constant 0 : index
    %c0_0 = arith.constant 0 : index
    %c0_1 = arith.constant 0 : index
    %0 = vector.load %arg2[%c0, %c0_0, %c0_1] : memref<1x8x32xf32, #tpu.memory_space<vmem>>, vector<1x8x32xf32>
    %1 = vector.shape_cast %0 : vector<1x8x32xf32> to vector<8x32xf32>
    %cst = arith.constant 0.176776692 : f32
    %2 = vector.broadcast %cst : f32 to vector<8x32xf32>
    %3 = arith.mulf %1, %2 : vector<8x32xf32>
    %c0_2 = arith.constant 0 : index
    %c0_3 = arith.constant 0 : index
    %c0_4 = arith.constant 0 : index
    %4 = vector.load %arg3[%c0_2, %c0_3, %c0_4] : memref<1x8x32xf32, #tpu.memory_space<vmem>>, vector<1x8x32xf32>
    %5 = vector.shape_cast %4 : vector<1x8x32xf32> to vector<8x32xf32>
    %c0_5 = arith.constant 0 : index
    %c0_6 = arith.constant 0 : index
    %c0_7 = arith.constant 0 : index
    %6 = vector.load %arg4[%c0_5, %c0_6, %c0_7] : memref<1x8x32xf32, #tpu.memory_space<vmem>>, vector<1x8x32xf32>
    %7 = vector.shape_cast %6 : vector<1x8x32xf32> to vector<8x32xf32>
    %cst_8 = arith.constant dense<0.000000e+00> : vector<8x8xf32>
    %8 = tpu.matmul %3, %5, %cst_8 {dimension_numbers = #tpu.dot_dimension_numbers<[1], [1], [0], [0], [0, 0, 1, 0], [], []>} : vector<8x32xf32>, vector<8x32xf32>, vector<8x8xf32> -> vector<8x8xf32>
    %cst_9 = arith.constant dense<0xFF800000> : vector<8xf32>
    %9 = vector.multi_reduction <maximumf>, %8, %cst_9 [1] : vector<8x8xf32> to vector<8xf32>
    %10 = vector.shape_cast %9 : vector<8xf32> to vector<8x1xf32>
    %11 = vector.broadcast %10 : vector<8x1xf32> to vector<8x8xf32>
    %12 = arith.subf %8, %11 : vector<8x8xf32>
    %13 = math.exp %12 : vector<8x8xf32>
    %cst_10 = arith.constant dense<0.000000e+00> : vector<8xf32>
    %14 = vector.multi_reduction <add>, %13, %cst_10 [1] : vector<8x8xf32> to vector<8xf32>
    %15 = vector.shape_cast %14 : vector<8xf32> to vector<8x1xf32>
    %16 = tpu.reciprocal %15 {approx = true} : vector<8x1xf32> -> vector<8x1xf32>
    %cst_11 = arith.constant dense<0.000000e+00> : vector<8x32xf32>
    %17 = tpu.matmul %13, %7, %cst_11 {dimension_numbers = #tpu.dot_dimension_numbers<[1], [0], [0], [1], [0, 0, 1, 1], [], []>} : vector<8x8xf32>, vector<8x32xf32>, vector<8x32xf32> -> vector<8x32xf32>
    %18 = vector.broadcast %16 : vector<8x1xf32> to vector<8x32xf32>
    %19 = arith.mulf %17, %18 : vector<8x32xf32>
    %c0_12 = arith.constant 0 : index
    %c0_13 = arith.constant 0 : index
    %c0_14 = arith.constant 0 : index
    %20 = vector.load %arg5[%c0_12, %c0_13, %c0_14] : memref<1x8x32xf32, #tpu.memory_space<vmem>>, vector<1x8x32xf32>
    %21 = vector.shape_cast %20 : vector<1x8x32xf32> to vector<8x32xf32>
    %22 = vector.shape_cast %19 : vector<8x32xf32> to vector<1x8x32xf32>
    tpu.vector_store %arg5[%c0_12, %c0_13, %c0_14], %22 {strides = array<i32>} : memref<1x8x32xf32, #tpu.memory_space<vmem>>, vector<1x8x32xf32>,
    return
  }
  func.func @transform_0(%arg0: i32, %arg1: i32) -> (i32, i32, i32) {
    %c0_i32 = arith.constant 0 : i32
    %c0_i32_0 = arith.constant 0 : i32
    return %arg0, %arg1, %c0_i32 : i32, i32, i32
  }
  func.func @transform_1(%arg0: i32, %arg1: i32) -> (i32, i32, i32) {
    %c0_i32 = arith.constant 0 : i32
    %c0_i32_0 = arith.constant 0 : i32
    %c0_i32_1 = arith.constant 0 : i32
    return %arg0, %c0_i32, %c0_i32_0 : i32, i32, i32
  }
  func.func @transform_2(%arg0: i32, %arg1: i32) -> (i32, i32, i32) {
    %c0_i32 = arith.constant 0 : i32
    %c0_i32_0 = arith.constant 0 : i32
    %c0_i32_1 = arith.constant 0 : i32
    return %arg0, %c0_i32, %c0_i32_0 : i32, i32, i32
  }
  func.func @transform_3(%arg0: i32, %arg1: i32) -> (i32, i32, i32) {
    %c0_i32 = arith.constant 0 : i32
    %c0_i32_0 = arith.constant 0 : i32
    return %arg0, %arg1, %c0_i32 : i32, i32, i32
  }
}

</mosaic_0001>

<bundles_post_ra>
// kernel: tpu_custom_call.1
= control target key start
LH: loop header
LB: loop body
LE: loop exit
PB: predicated region body
PF: predicated region fallthrough
CT: control target
= control target key end

     0   :  { %s1096_s0 = inlined_call_operand.hbm [shape: f32[2,8,32], index: 0, kind: input, shape index: {}]   ;;  %s1097_s1 = inlined_call_operand.hbm [shape: f32[2,8,32], index: 1, kind: input, shape index: {}]   ;;  %s1098_s2 = inlined_call_operand.hbm [shape: f32[2,8,32], index: 2, kind: input, shape index: {}]   ;;  %s1099_s3 = inlined_call_operand.hbm [shape: f32[2,8,32], index: 3, kind: output, shape index: {}]  }
   0x1   :  { %1103 = sst [smem:[#allocation14_spill]] %s1097_s1 }
   0x2   :  { %8 = vsyncpa [#allocation3], 0 }
   0x3   :  { %10 = vsyncpa [#allocation3 + $0x1], 0 }
   0x4   :  { %11 = vsyncpa [#allocation6], 0 }
   0x5   :  { %13 = vsyncpa [#allocation6 + $0x1], 0 }
   0x6   :  { %14 = vsyncpa [#allocation4], 0 }
   0x7   :  { %16 = vsyncpa [#allocation4 + $0x1], 0  ;;  %s889_s12 = smov 0   ;;  %s891_s13 = smov 0  }
   0x8   :  { %s893_s14 = smov 0   ;;  %s895_s15 = smov 0  }
   0x9   :  { %s897_s16 = smov 0   ;;  %s899_s17 = smov 0  }
   0xa LB: > { %1104 = sst [smem:[#allocation12_spill]] %s857_s16  ;;  %s920_s18 = sadd.s32 4294967295, %s861_s17   ;;  %s861_s17 = sphi %s899_s17, %s22_s17   ;;  %s857_s16 = sphi %s897_s16, %s1116_s16   ;;  %s853_s15 = sphi %s895_s15, %s1115_s15   ;;  %s849_s14 = sphi %s893_s14, %s1119_s14   ;;  %s845_s13 = sphi %s891_s13, %s1118_s13   ;;  %s841_s12 = sphi %s889_s12, %s1117_s12  }
   0xb   : > { %s580_s19 = sadd.s32 4294967294, %s861_s17   ;;  %s34_s20 = sadd.s32 1, %s857_s16 }
   0xc   : > { %s43_s21 = sadd.s32 1, %s849_s14  ;;  %p36_p0 = scmp.ge.s32.totalorder %s34_s20, 2 }
   0xd   : > { %p50_p1 = scmp.ne.s32.totalorder %s849_s14, %s845_s13  ;;  %p51_p2 = scmp.eq.s32.totalorder %s861_s17, 0 }
   0xe   : > { %p56_p3 = scmp.ne.s32.totalorder %s845_s13, %s841_s12  ;;  %s1121_s20 = smov (%p36_p0, %s34_s20), 0 }
   0xf   : > { %1105 = sst [smem:[#allocation13_spill]] %s1121_s20  ;;  %p932_p4 = por %p51_p2, %p50_p1 }
  0x10   : > { %p57_p5 = scmp.eq.s32.totalorder %s920_s18, 0  ;;  %s38_s23 = ssub.s32 %s857_s16, %s1121_s20 }
  0x11   : > { %p134_p6 = scmp.eq.s32.totalorder %s920_s18, 1  ;;  %p41_p7 = scmp.eq.s32.totalorder %s38_s23, 0 }
  0x12   : > { %p940_p8 = por %p57_p5, %p56_p3  ;;  %p140_p10 = scmp.eq.s32.totalorder %s580_s19, 1 }
  0x13   : > { %p944_p9 = por %p134_p6, %p50_p1  ;;  %p637_p13 = scmp.lt.s32.totalorder %s861_s17, 2 }
  0x14   : > { %s949_s26 = scalar_select %p41_p7, %s849_s14, %s43_s21  }
  0x15   : > { %p951_p11 = por %p140_p10, %p56_p3  ;;  %s1100_s28 = sand.u32 1, %s849_s14  }
  0x16   : > { %s960_s29 = sshll.u32 %s1100_s28, 3  ;;  %s963_s30 = sshll.u32 %s857_s16, 7 }
  0x17   : > { %p967_p0 = pnand %p637_p13, %p932_p4  ;;  %s179_s5 = sand.u32 1, %s861_s17  }
  0x18   : > { %s1111_s1 = sld [smem:[#allocation14_spill]]  ;;  %s183_s9 = scalar_lea.vmem [#allocation5], %s960_s29 }
  0x19   : > { %s190_s10 = sshll.u32 %s183_s9, 4  ;;  %p589_p1 = scmp.ge.s32.totalorder %s861_s17, 1  ;;  %s191_s10 = int_to_ptr.vmem [resolvable:$true] %s190_s10 }
  0x1a   : > { %p213_p2 = scmp.lt.s32.totalorder %s861_s17, 3  ;;  %s979_s11 = scalar_lea.sflag [#allocation6], %s179_s5 }
  0x1b   : > { %p695_p3 = pneg %p967_p0  ;;  %s706_s19 = scalar_lea.vmem %s191_s10, 128 }
  0x1c   : > { %p707_p4 = scmp.ne.s32.totalorder %s191_s10, %s706_s19  ;;  %s863_s21 = smov [#allocation5]  }
  0x1d   : > { %s711_s22 = sshll.u32 %s863_s21, 4  ;;  %s712_s22 = int_to_ptr.vmem [resolvable:$false] %s711_s22 }
  0x1e   : > { %s188_s8 = scalar_lea.hbm %s1111_s1, %s963_s30  ;;  %p709_p5 = pnand %p707_p4, %p695_p3 }
  0x1f   : > { %s713_s23 = scalar_lea.vmem %s712_s22, 256  ;;  %p714_p7 = scmp.lt.s32.totalorder %s191_s10, %s712_s22 }
  0x20   : > { %p710_p6 = pneg %p709_p5  ;;  %p715_p10 = scmp.lt.s32.totalorder %s713_s23, %s706_s19 }
  0x22   : > { %p716_p13 = por %p715_p10, %p714_p7 }
  0x24   : > { %p717_p12 = pnand %p716_p13, %p710_p6 }
  0x26   : > { %720 = shalt.err (!%p717_p12)
}
  0x27   : > { %629 = dma.hbm_to_vmem [thread:$0]  (!%p967_p0), %s188_s8, 128, %s191_s10, %s979_s11  }
  0x28   : > { %p993_p4 = pnand %p589_p1, %p213_p2  ;;  %s170_s9 = scalar_lea.hbm %s1096_s0, %s963_s30 }
  0x29   : > { %s164_s19 = scalar_lea.vmem [#allocation2], %s960_s29  ;;  %s206_s28 = scalar_lea.hbm %s1098_s2, %s963_s30 }
  0x2a   : > { %s172_s21 = sshll.u32 %s164_s19, 4  ;;  %s1113_s1 = sand.u32 1, %s849_s14   ;;  %s173_s21 = int_to_ptr.vmem [resolvable:$true] %s172_s21 }
  0x2b   : > { %s161_s20 = scalar_lea.sflag [#allocation3], %s1113_s1  ;;  %s734_s8 = scalar_lea.vmem %s173_s21, 128 }
  0x2c   : > { %p735_p12 = scmp.ne.s32.totalorder %s173_s21, %s734_s8  ;;  %s864_s10 = smov [#allocation2]  }
  0x2d   : > { %s739_s16 = sshll.u32 %s864_s10, 4  ;;  %s740_s16 = int_to_ptr.vmem [resolvable:$false] %s739_s16 }
  0x2e   : > { %p737_p1 = pnand %p735_p12, %p695_p3  ;;  %s741_s6 = scalar_lea.vmem %s740_s16, 256 }
  0x2f   : > { %p742_p5 = scmp.lt.s32.totalorder %s173_s21, %s740_s16  ;;  %p743_p6 = scmp.lt.s32.totalorder %s741_s6, %s734_s8 }
  0x30   : > { %p738_p2 = pneg %p737_p1 }
  0x31   : > { %p744_p7 = por %p743_p6, %p742_p5 }
  0x33   : > { %p745_p10 = pnand %p744_p7, %p738_p2 }
  0x35   : > { %748 = shalt.err (!%p745_p10)
}
  0x36   : > { %626 = dma.hbm_to_vmem [thread:$0]  (!%p967_p0), %s170_s9, 128, %s173_s21, %s161_s20  }
  0x37   : > { %s201_s1 = scalar_lea.vmem [#allocation7], %s960_s29  ;;  %s865_s22 = smov [#allocation7]  }
  0x38   : > { %s208_s7 = sshll.u32 %s201_s1, 4  ;;  %s767_s16 = sshll.u32 %s865_s22, 4  ;;  %s209_s7 = int_to_ptr.vmem [resolvable:$true] %s208_s7  ;;  %s768_s16 = int_to_ptr.vmem [resolvable:$false] %s767_s16 }
  0x39   : > { %s762_s19 = scalar_lea.vmem %s209_s7, 128  ;;  %s769_s23 = scalar_lea.vmem %s768_s16, 256 }
  0x3a   : > { %p763_p13 = scmp.ne.s32.totalorder %s209_s7, %s762_s19  ;;  %p770_p2 = scmp.lt.s32.totalorder %s209_s7, %s768_s16 }
  0x3b   : > { %p771_p5 = scmp.lt.s32.totalorder %s769_s23, %s762_s19 }
  0x3c   : > { %p765_p12 = pnand %p763_p13, %p695_p3 }
  0x3d   : > { %p772_p6 = por %p771_p5, %p770_p2 }
  0x3e   : > { %p766_p1 = pneg %p765_p12 }
  0x40   : > { %p773_p7 = pnand %p772_p6, %p766_p1 }
  0x42   : > { %776 = shalt.err (!%p773_p7)
}
  0x43   : > { %632 = dma.hbm_to_vmem [thread:$0]  (!%p967_p0), %s206_s28, 128, %s209_s7, %s979_s11  }
  0x44   : > { %217 = sbr.rel (%p993_p4) target bundleno = 641 (0x281), region = 32  ;;  %s1028_s9 = sand.u32 (!%p993_p4), 1, %s845_s13  }
  0x45   : > { %s1031_s21 = sshll.u32 (!%p993_p4), %s1028_s9, 3  ;;  %s220_s4 = scalar_lea.sflag (!%p993_p4), [#allocation3], %s1028_s9 }
  0x46   : > { %s223_s8 = scalar_lea.vmem (!%p993_p4), [#allocation2], %s1031_s21 }
  0x49   : > { %828 = dma.done.wait (%p940_p8), %s220_s4, 128  }
  0x4a   : > { %830 = vsyncadd (%p940_p8), %s220_s4, 4294967168  ;;  %s228_s28 = sand.u32 1, %s920_s18   ;;  %s232_s11 = scalar_lea.vmem [#allocation5], %s1031_s21 }
  0x4b   : > { %s229_s30 = scalar_lea.sflag [#allocation6], %s228_s28 }
  0x4c   : > { %832 = dma.done.wait (%p940_p8), %s229_s30, 256  }
  0x4d   : > { %834 = vsyncadd (%p940_p8), %s229_s30, 4294967040  ;;  %v866_v0 = vmov 0.0   ;;  %vm867_vm0 = vmmov 0   ;;  %vm278_vm1 = vcmask 261120   ;;  %v276_v1 = vld [vmem:[%s232_s11] sm:$0xff]  ;;  %v274_v2 = vld [vmem:[%s223_s8] sm:$0xff] }
  0x4e   : > { %605 = vmatprep.subr.mxu0 %v866_v0  ;;  %607 = vmatprep.mubr.msk.f32.mxu0 %vm867_vm0, %v866_v0  ;;  %v275_v3 = vmul.f32 0.17677669, %v274_v2  ;;  %vm355_vm2 = vcmask 64512   ;;  %s241_s18 = scalar_lea.vmem [#allocation7], %s1031_s21  ;;  %s598_s24 = sshll.u32 %s853_s15, 7 }
  0x4f   : > { %610 = vmatprep.subr.mxu1 %v866_v0  ;;  %612 = vmatprep.mubr.msk.f32.mxu1 %vm867_vm0, %v866_v0  ;;  %v277_v7 = vld [vmem:[%s241_s18] sm:$0xff]  ;;  %s273_s5 = scalar_lea.vmem [#allocation8], %s1031_s21  ;;  %s1053_s7 = scalar_lea.hbm %s1099_s3, %s598_s24 }
  0x50   : > { %606 = vmatpush3.xpose.msk.msra.mxu0 %vm278_vm1, %v276_v1  ;;  %611 = vmatpush3.msra.mxu1 %v277_v7  ;;  %s456_s10 = sshll.u32 %s273_s5, 4  ;;  %s442_s19 = scalar_lea.sflag [#allocation4], %s1028_s9  ;;  %s457_s10 = int_to_ptr.vmem [resolvable:$true] %s456_s10 }
  0x51   : > { %s777_s22 = scalar_lea.vmem %s457_s10, 128  ;;  %s868_s15 = smov [#allocation8]  }
  0x52   : > { %p778_p8 = scmp.ne.s32.totalorder %s457_s10, %s777_s22  ;;  %s781_s16 = sshll.u32 %s868_s15, 4  ;;  %s782_s16 = int_to_ptr.vmem [resolvable:$false] %s781_s16 }
  0x53   : > { %608 = vmatmul.mubr.msk.f32.vlgmr.msra.gmra.mxu0 %vm278_vm1, %v275_v3  ;;  %s783_s23 = scalar_lea.vmem %s782_s16, 256  ;;  %p784_p4 = scmp.lt.s32.totalorder %s457_s10, %s782_s16 }
  0x54   : > { %p779_p0 = pnand %p778_p8, %p944_p9  ;;  %p785_p10 = scmp.lt.s32.totalorder %s783_s23, %s777_s22 }
  0x56   : > { %p780_p3 = pneg %p779_p0  ;;  %p786_p13 = por %p785_p10, %p784_p4 }
  0x58   : > { %p787_p12 = pnand %p786_p13, %p780_p3 }
 0x113   : > { %v351_v4 = vpop.f32.mrf.mxu0 }
 0x114   : > { %v356_v5 = vsel %vm355_vm2, %v351_v4, -inf }
 0x115   : > { %357 = vmax.xlane.f32.xlu0 %v356_v5  ;;  %v609_v6 = vpop.f32.mrf.mxu0 }
 0x19e   : > { %v358_v8 = vpop.xlane.xlu0 %357 }
 0x19f   : > { %v359_v9 = vsub.f32 %v351_v4, %v358_v8 }
 0x1a1   : > { %v360_v10 = vmul.f32 1.442695, %v359_v9 }
 0x1a3   : > { %689 = vpow2.f32 %v360_v10 }
 0x1b0   : > { %v690_v11 = vpop.eup %689 }
 0x1b1   : > { %613 = vmatmul.mubr.msk.f32.vlgmr.msra.gmra.mxu1 %vm355_vm2, %v690_v11  ;;  %v362_v12 = vsel %vm355_vm2, %v690_v11, 0.0 }
 0x1b2   : > { %363 = vadd.xlane.f32.xlu0 %v362_v12 }
 0x23b   : > { %v364_v13 = vpop.xlane.xlu0 %363 }
 0x23c   : > { %691 = vrcp.f32 %v364_v13 }
 0x249   : > { %v692_v14 = vpop.eup %691 }
 0x271   : > { %v435_v15 = vpop.f32.mrf.mxu1 }
 0x272   : > { %v439_v16 = vmul.f32 %v692_v14, %v435_v15 }
 0x273   : > { %v614_v17 = vpop.f32.mrf.mxu1 }
 0x274   : > { %440 = vst.msk [vmem:[%s273_s5] sm:$0xff] %vm278_vm1, %v439_v16 }
 0x275   : > { %790 = shalt.err (!%p787_p12)
}
 0x276   : > { %s791_s20 = scalar_lea.hbm %s1053_s7, 128  ;;  %s795_s21 = scalar_lea.hbm %s1099_s3, 256 }
 0x277   : > { %p792_p1 = scmp.ne.s32.totalorder %s1053_s7, %s791_s20  ;;  %p796_p6 = scmp.lt.s32.totalorder %s1053_s7, %s1099_s3 }
 0x278   : > { %p797_p7 = scmp.lt.s32.totalorder %s795_s21, %s791_s20 }
 0x279   : > { %p793_p2 = pnand %p792_p1, %p944_p9 }
 0x27a   : > { %p798_p8 = por %p797_p7, %p796_p6 }
 0x27b   : > { %p794_p5 = pneg %p793_p2 }
 0x27d   : > { %p799_p0 = pnand %p798_p8, %p794_p5 }
 0x27f   : > { %802 = shalt.err (!%p799_p0)
}
 0x280   : > { %621 = dma.vmem_to_hbm [thread:$0]  (%p944_p9), %s457_s10, 128, %s1053_s7, %s442_s19  }
 0x281 PF: > { %s468_s28 = sand.u32 1, %s841_s12   ;;  %p1114_p3 = scmp.ge.s32.totalorder %s861_s17, 2 }
 0x282   : > { %s469_s30 = scalar_lea.sflag [#allocation4], %s468_s28 }
 0x283   : > { %p634_p4 = pnand %p1114_p3, %p951_p11 }
 0x285   : > { %p635_p10 = pneg %p634_p4 }
 0x287   : > { %836 = dma.done.wait (%p635_p10), %s469_s30, 128  }
 0x288   : > { %838 = vsyncadd (%p635_p10), %s469_s30, 4294967168  ;;  %s22_s17 = sadd.s32 1, %s861_s17   ;;  %s1115_s15 = sld [smem:[#allocation12_spill]] }
 0x289   : > { %p19_p13 = scmp.ge.s32.totalorder %s22_s17, 4   ;;  %s1116_s16 = sld [smem:[#allocation13_spill]] }
 0x28a   : > { %s1117_s12 = smov %s845_s13  ;;  %s1118_s13 = smov %s849_s14 }
 0x28b   : > { %s1119_s14 = smov %s949_s26  ;;  %21 = sbr.rel (!%p19_p13) target bundleno = 10 (0xa), region = 101 }
 0x290   :  { %474 = vsyncpa [#allocation3], 1 }
 0x291   :  { %476 = vsyncpa [#allocation3 + $0x1], 1 }
 0x292   :  { %477 = vsyncpa [#allocation6], 1 }
 0x293   :  { %479 = vsyncpa [#allocation6 + $0x1], 1 }
 0x294   :  { %480 = vsyncpa [#allocation4], 1 }
 0x295   :  { %482 = vsyncpa [#allocation4 + $0x1], 1 }

</bundles_post_ra>
